<compile_context>
chip_gen: v6e
topology: v6e:2x2x1
jax: 0.10.0
libtpu: 0.0.40
codegen_flags: <defaults>
</compile_context>

<pallas_src>
import jax
import jax.numpy as jnp
from jax.experimental import pallas as pl
from jax.experimental.pallas import tpu as pltpu


def _round_up(x, m):
    return ((x + m - 1) // m) * m


def _pick_tile(dim, max_tile, granule):
    """Largest tile (multiple of `granule`, <= max_tile) minimizing padding."""
    padded_min = _round_up(dim, granule)
    max_tile = max(granule, (max_tile // granule) * granule)
    if padded_min <= max_tile:
        return padded_min          # single block along this axis, minimal pad
    best_t, best_padded = granule, None
    for t in range(max_tile, granule - 1, -granule):
        padded = _round_up(dim, t)
        if best_padded is None or padded < best_padded:
            best_padded, best_t = padded, t
    return best_t


def _clinear_kernel(x_ref, w_ref, m_ref, b_ref, o_ref, acc_ref):
    k = pl.program_id(2)

    @pl.when(k == 0)
    def _():
        acc_ref[...] = jnp.zeros_like(acc_ref)

    x = x_ref[...]
    w = w_ref[...]
    # Mask fold on the VPU (hidden under the MXU/DMA-bound loop).
    wm = (w * m_ref[...].astype(w.dtype)).astype(x.dtype)
    # x:(tm,tk) contracted with masked-w:(tn,tk) over the last dim -> (tm,tn).
    acc_ref[...] += jax.lax.dot_general(
        x, wm,
        dimension_numbers=(((1,), (1,)), ((), ())),
        preferred_element_type=jnp.float32,
    )

    @pl.when(k == pl.num_programs(2) - 1)
    def _():
        o_ref[...] = (acc_ref[...] + b_ref[...]).astype(o_ref.dtype)


def clinear(x, w, c_mask, b, *, tm=256, tn=512, tk=512, use_bf16=False,
            vmem_limit_bytes=None):
    """Same math as F.linear(x, w * c_mask, b).

    x: (..., In), w / c_mask: (Out, In), b: (Out,) -> (..., Out)
    """
    orig_dtype = x.dtype
    lead_shape = x.shape[:-1]
    In = x.shape[-1]
    Out = w.shape[0]

    x2 = x.reshape(-1, In)
    if use_bf16:
        # Activation-only cast; weights/mask stream in their stored dtype and
        # are cast to the activation dtype inside the kernel before the dot.
        x2 = x2.astype(jnp.bfloat16)
    B = x2.shape[0]

    # Sublane granule depends on the activation dtype (8 for f32, 16 for bf16).
    m_granule = max(8, 32 // jnp.dtype(x2.dtype).itemsize)
    tm = _pick_tile(B, tm, m_granule)
    tn = _pick_tile(Out, tn, 128)
    tk = _pick_tile(In, tk, 128)
    Bp, Op, Ip = _round_up(B, tm), _round_up(Out, tn), _round_up(In, tk)

    # v7x has 2 TensorCores: if both "parallel" axes collapsed to one block,
    # shrink tn so the Out axis has >= 2 blocks (no-op on v5e/v6e).
    if Bp // tm == 1 and Op // tn == 1 and Op >= 256:
        tn = _pick_tile(Out, max(128, (tn // 2 // 128) * 128), 128)
        Op = _round_up(Out, tn)

    # Zero padding only where needed (zeros along K contribute nothing; padded
    # rows / output columns are sliced away below).
    xp = x2 if (Bp == B and Ip == In) else jnp.pad(x2, ((0, Bp - B), (0, Ip - In)))
    wp = w if (Op == Out and Ip == In) else jnp.pad(w, ((0, Op - Out), (0, Ip - In)))
    mp = c_mask if (Op == Out and Ip == In) else jnp.pad(
        c_mask, ((0, Op - Out), (0, Ip - In)))
    bp = b.astype(jnp.float32).reshape(1, Out)
    if Op != Out:
        bp = jnp.pad(bp, ((0, 0), (0, Op - Out)))

    grid = (Bp // tm, Op // tn, Ip // tk)

    out_itemsize = jnp.dtype(orig_dtype).itemsize
    cost = pl.CostEstimate(
        flops=2 * Bp * Op * Ip,
        transcendentals=0,
        bytes_accessed=int(
            xp.size * jnp.dtype(xp.dtype).itemsize
            + wp.size * jnp.dtype(wp.dtype).itemsize
            + mp.size * jnp.dtype(mp.dtype).itemsize
            + bp.size * 4
            + Bp * Op * out_itemsize),
    )

    cp_kwargs = dict(dimension_semantics=("parallel", "parallel", "arbitrary"))
    if vmem_limit_bytes is not None:
        cp_kwargs["vmem_limit_bytes"] = vmem_limit_bytes

    out = pl.pallas_call(
        _clinear_kernel,
        out_shape=jax.ShapeDtypeStruct((Bp, Op), orig_dtype),
        grid_spec=pltpu.PrefetchScalarGridSpec(
            num_scalar_prefetch=0,
            grid=grid,
            in_specs=[
                pl.BlockSpec((tm, tk), lambda i, j, k: (i, k)),   # activations
                pl.BlockSpec((tn, tk), lambda i, j, k: (j, k)),   # weights
                pl.BlockSpec((tn, tk), lambda i, j, k: (j, k)),   # mask
                pl.BlockSpec((1, tn), lambda i, j, k: (0, j)),    # bias
            ],
            out_specs=pl.BlockSpec((tm, tn), lambda i, j, k: (i, j)),
            scratch_shapes=[pltpu.VMEM((tm, tn), jnp.float32)],
        ),
        compiler_params=pltpu.CompilerParams(**cp_kwargs),
        cost_estimate=cost,
    )(xp, wp, mp, bp)

    if Bp != B or Op != Out:
        out = out[:B, :Out]
    return out.reshape(*lead_shape, Out)


def init_clinear_params(key, input_size, output_size):
    """Deterministic init mirroring the PyTorch module's __init__."""
    kw, kb = jax.random.split(key)
    # xavier_uniform_: U(-a, a), a = sqrt(6 / (fan_in + fan_out))
    bound = (6.0 / (input_size + output_size)) ** 0.5
    w = jax.random.uniform(
        kw, (output_size, input_size), jnp.float32, minval=-bound, maxval=bound
    )
    # torch.nn.init.uniform_: U(0, 1)
    b = jax.random.uniform(kb, (output_size,), jnp.float32, minval=0.0, maxval=1.0)
    c_mask = jnp.ones((output_size, input_size), jnp.float32)
    return w, b, c_mask


if __name__ == "__main__":
    key = jax.random.PRNGKey(0)

    # --- Small demo shapes (matching the PyTorch module's typical tiny use) ---
    batch, input_size, output_size = 8, 32, 16
    kx, kp, kx2, kp2 = jax.random.split(key, 4)
    x = jax.random.normal(kx, (batch, input_size), jnp.float32)
    w, b, c_mask = init_clinear_params(kp, input_size, output_size)

    y = clinear(x, w, c_mask, b)
    jax.block_until_ready(y)
    y_ref = x @ (w * c_mask).T + b
    assert y.shape == (batch, output_size)
    assert jnp.allclose(y, y_ref, atol=1e-5, rtol=1e-5)

    # --- Larger check: exercises the multi-tile K-loop + fused-mask path ---
    B2, In2, Out2 = 64, 640, 384
    x2 = jax.random.normal(kx2, (B2, In2), jnp.float32)
    w2, b2, m2 = init_clinear_params(kp2, In2, Out2)
    # non-trivial mask so the in-kernel fold is actually tested
    m2 = (jax.random.uniform(kp2, (Out2, In2)) > 0.5).astype(jnp.float32)

    y2 = clinear(x2, w2, m2, b2)
    jax.block_until_ready(y2)
    y2_ref = x2 @ (w2 * m2).T + b2
    assert y2.shape == (B2, Out2)
    assert jnp.allclose(y2, y2_ref, atol=1e-4, rtol=1e-4)

    print("KERNEL_OK")
</pallas_src>

<mosaic_0001>
module attributes {stable_mosaic.version = 11 : i64} {
  func.func @_clinear_kernel(%arg0: i32, %arg1: i32, %arg2: i32, %arg3: memref<8x128xf32, #tpu.memory_space<vmem>>, %arg4: memref<128x128xf32, #tpu.memory_space<vmem>>, %arg5: memref<128x128xf32, #tpu.memory_space<vmem>>, %arg6: memref<1x128xf32, #tpu.memory_space<vmem>>, %arg7: memref<8x128xf32, #tpu.memory_space<vmem>>, %arg8: memref<8x128xf32, #tpu.memory_space<vmem>>) attributes {dimension_semantics = [#tpu.dimension_semantics<parallel>, #tpu.dimension_semantics<parallel>, #tpu.dimension_semantics<arbitrary>], iteration_bounds = array<i64: 1, 1, 1>, scalar_prefetch = 0 : i64, scratch_operands = 1 : i64, tpu.core_type = #tpu.core_type<tc>, window_params = [{transform_indices = @transform_0, window_bounds = array<i64: 8, 128>}, {transform_indices = @transform_1, window_bounds = array<i64: 128, 128>}, {transform_indices = @transform_2, window_bounds = array<i64: 128, 128>}, {transform_indices = @transform_3, window_bounds = array<i64: 1, 128>}, {transform_indices = @transform_4, window_bounds = array<i64: 8, 128>}]} {
    %c0_i32 = arith.constant 0 : i32
    %0 = arith.cmpi eq, %arg2, %c0_i32 : i32
    %1 = arith.extui %0 : i1 to i32
    %c0_i32_0 = arith.constant 0 : i32
    %2 = arith.cmpi ne, %1, %c0_i32_0 : i32
    scf.if %2 {
      %cst_12 = arith.constant 0.000000e+00 : f32
      %14 = vector.broadcast %cst_12 : f32 to vector<8x128xf32>
      %c0_13 = arith.constant 0 : index
      %c0_14 = arith.constant 0 : index
      %15 = vector.load %arg8[%c0_13, %c0_14] : memref<8x128xf32, #tpu.memory_space<vmem>>, vector<8x128xf32>
      tpu.vector_store %arg8[%c0_13, %c0_14], %14 {strides = array<i32>} : memref<8x128xf32, #tpu.memory_space<vmem>>, vector<8x128xf32>,
    } else {
    }
    %c0 = arith.constant 0 : index
    %c0_1 = arith.constant 0 : index
    %3 = vector.load %arg3[%c0, %c0_1] : memref<8x128xf32, #tpu.memory_space<vmem>>, vector<8x128xf32>
    %c0_2 = arith.constant 0 : index
    %c0_3 = arith.constant 0 : index
    %4 = vector.load %arg4[%c0_2, %c0_3] : memref<128x128xf32, #tpu.memory_space<vmem>>, vector<128x128xf32>
    %c0_4 = arith.constant 0 : index
    %c0_5 = arith.constant 0 : index
    %5 = vector.load %arg5[%c0_4, %c0_5] : memref<128x128xf32, #tpu.memory_space<vmem>>, vector<128x128xf32>
    %6 = arith.mulf %4, %5 : vector<128x128xf32>
    %c0_6 = arith.constant 0 : index
    %c0_7 = arith.constant 0 : index
    %7 = vector.load %arg8[%c0_6, %c0_7] : memref<8x128xf32, #tpu.memory_space<vmem>>, vector<8x128xf32>
    %cst = arith.constant dense<0.000000e+00> : vector<8x128xf32>
    %8 = tpu.matmul %3, %6, %cst {dimension_numbers = #tpu.dot_dimension_numbers<[1], [1], [0], [0], [0, 0, 1, 0], [], []>} : vector<8x128xf32>, vector<128x128xf32>, vector<8x128xf32> -> vector<8x128xf32>
    %9 = arith.addf %7, %8 : vector<8x128xf32>
    %c0_8 = arith.constant 0 : index
    %c0_9 = arith.constant 0 : index
    %10 = vector.load %arg8[%c0_8, %c0_9] : memref<8x128xf32, #tpu.memory_space<vmem>>, vector<8x128xf32>
    tpu.vector_store %arg8[%c0_8, %c0_9], %9 {strides = array<i32>} : memref<8x128xf32, #tpu.memory_space<vmem>>, vector<8x128xf32>,
    %c0_i32_10 = arith.constant 0 : i32
    %11 = arith.cmpi eq, %arg2, %c0_i32_10 : i32
    %12 = arith.extui %11 : i1 to i32
    %c0_i32_11 = arith.constant 0 : i32
    %13 = arith.cmpi ne, %12, %c0_i32_11 : i32
    scf.if %13 {
      %c0_12 = arith.constant 0 : index
      %c0_13 = arith.constant 0 : index
      %14 = vector.load %arg8[%c0_12, %c0_13] : memref<8x128xf32, #tpu.memory_space<vmem>>, vector<8x128xf32>
      %c0_14 = arith.constant 0 : index
      %c0_15 = arith.constant 0 : index
      %15 = vector.load %arg6[%c0_14, %c0_15] : memref<1x128xf32, #tpu.memory_space<vmem>>, vector<1x128xf32>
      %16 = vector.broadcast %15 : vector<1x128xf32> to vector<8x128xf32>
      %17 = arith.addf %14, %16 : vector<8x128xf32>
      %c0_16 = arith.constant 0 : index
      %c0_17 = arith.constant 0 : index
      %18 = vector.load %arg7[%c0_16, %c0_17] : memref<8x128xf32, #tpu.memory_space<vmem>>, vector<8x128xf32>
      tpu.vector_store %arg7[%c0_16, %c0_17], %17 {strides = array<i32>} : memref<8x128xf32, #tpu.memory_space<vmem>>, vector<8x128xf32>,
    } else {
    }
    return
  }
  func.func @transform_0(%arg0: i32, %arg1: i32, %arg2: i32) -> (i32, i32) {
    %c0_i32 = arith.constant 0 : i32
    return %arg0, %arg2 : i32, i32
  }
  func.func @transform_1(%arg0: i32, %arg1: i32, %arg2: i32) -> (i32, i32) {
    %c0_i32 = arith.constant 0 : i32
    return %arg1, %arg2 : i32, i32
  }
  func.func @transform_2(%arg0: i32, %arg1: i32, %arg2: i32) -> (i32, i32) {
    %c0_i32 = arith.constant 0 : i32
    return %arg1, %arg2 : i32, i32
  }
  func.func @transform_3(%arg0: i32, %arg1: i32, %arg2: i32) -> (i32, i32) {
    %c0_i32 = arith.constant 0 : i32
    %c0_i32_0 = arith.constant 0 : i32
    return %c0_i32, %arg1 : i32, i32
  }
  func.func @transform_4(%arg0: i32, %arg1: i32, %arg2: i32) -> (i32, i32) {
    %c0_i32 = arith.constant 0 : i32
    return %arg0, %arg1 : i32, i32
  }
}

</mosaic_0001>

<bundles_post_ra>
// kernel: tpu_custom_call.1
= control target key start
LH: loop header
LB: loop body
LE: loop exit
PB: predicated region body
PF: predicated region fallthrough
CT: control target
= control target key end

     0   :  { %9 = vsyncpa [#allocation4], 0  ;;  %s425_s0 = inlined_call_operand.hbm [shape: f32[8,128], index: 0, kind: input, shape index: {}]   ;;  %s426_s1 = inlined_call_operand.hbm [shape: f32[128,128], index: 1, kind: input, shape index: {}]   ;;  %s427_s2 = inlined_call_operand.hbm [shape: f32[128,128], index: 2, kind: input, shape index: {}]   ;;  %s428_s3 = inlined_call_operand.vmem [shape: f32[1,128], index: 3, kind: input, shape index: {}]   ;;  %s429_s4 = inlined_call_operand.hbm [shape: f32[8,128], index: 4, kind: output, shape index: {}]  }
   0x1   :  { %10 = vsyncpa [#allocation7], 0 }
   0x2   :  { %11 = vsyncpa [#allocation5], 0  ;;  %s360_s15 = smov [#allocation6]  }
   0x3   :  { %s27_s16 = sshll.u32 %s360_s15, 4  ;;  %s28_s16 = int_to_ptr.vmem [resolvable:$true] %s27_s16 }
   0x4   :  { %s282_s17 = scalar_lea.vmem %s28_s16, 2048  ;;  %p287_p1 = scmp.lt.s32.totalorder %s28_s16, %s28_s16 }
   0x5   :  { %p283_p0 = scmp.ne.s32.totalorder %s28_s16, %s282_s17  ;;  %p288_p2 = scmp.lt.s32.totalorder %s282_s17, %s282_s17 }
   0x7   :  { %p289_p3 = por %p288_p2, %p287_p1 }
   0x9   :  { %p290_p4 = pnand %p289_p3, %p283_p0 }
   0xb   :  { %293 = shalt.err (!%p290_p4)
}
   0xc   :  { %s361_s18 = smov 128   ;;  %s362_s19 = smov 8  }
   0xd   :  { %33 = dma.hbm_to_vmem [thread:$0]  %s426_s1, 2048, %s28_s16, [#allocation7], %s361_s18, %s361_s18, %s362_s19  }
   0xe   :  { %s363_s22 = smov [#allocation3]   ;;  %s364_s24 = smov [#allocation8]  }
   0xf   :  { %s18_s23 = sshll.u32 %s363_s22, 4  ;;  %s39_s25 = sshll.u32 %s364_s24, 4  ;;  %s19_s23 = int_to_ptr.vmem [resolvable:$true] %s18_s23  ;;  %s40_s25 = int_to_ptr.vmem [resolvable:$true] %s39_s25 }
  0x10   :  { %s302_s26 = scalar_lea.vmem %s19_s23, 128  ;;  %p307_p6 = scmp.lt.s32.totalorder %s19_s23, %s19_s23 }
  0x11   :  { %p303_p5 = scmp.ne.s32.totalorder %s19_s23, %s302_s26  ;;  %p308_p7 = scmp.lt.s32.totalorder %s302_s26, %s302_s26 }
  0x13   :  { %p309_p8 = por %p308_p7, %p307_p6 }
  0x15   :  { %p310_p9 = pnand %p309_p8, %p303_p5 }
  0x17   :  { %313 = shalt.err (!%p310_p9)
}
  0x18   :  { %21 = dma.hbm_to_vmem [thread:$0]  %s425_s0, 128, %s19_s23, [#allocation4]  }
  0x19   :  { %s322_s29 = scalar_lea.vmem %s40_s25, 2048  ;;  %p327_p11 = scmp.lt.s32.totalorder %s40_s25, %s40_s25 }
  0x1a   :  { %p323_p10 = scmp.ne.s32.totalorder %s40_s25, %s322_s29  ;;  %p328_p12 = scmp.lt.s32.totalorder %s322_s29, %s322_s29 }
  0x1c   :  { %p329_p13 = por %p328_p12, %p327_p11 }
  0x1e   :  { %p330_p0 = pnand %p329_p13, %p323_p10 }
  0x20   :  { %333 = shalt.err (!%p330_p0)
}
  0x21   :  { %45 = dma.hbm_to_vmem [thread:$0]  %s427_s2, 2048, %s40_s25, [#allocation7], %s361_s18, %s361_s18, %s362_s19  }
  0x22   :  { %354 = dma.done.wait [#allocation4], 128  }
  0x23   :  { %355 = vsyncadd [#allocation4], 4294967168 }
  0x24   :  { %356 = dma.done.wait [#allocation7], 4096  }
  0x25   :  { %357 = vsyncadd [#allocation7], 4294963200  ;;  %v365_v0 = vmov 0.0   ;;  %vm366_vm0 = vmmov 0   ;;  %v78_v1 = vld [vmem:[#allocation6 + $0x78] sm:$0xff]  ;;  %v77_v3 = vld [vmem:[#allocation6 + $0x70] sm:$0xff] }
  0x26   :  { %231 = vmatprep.subr.mxu0 %v365_v0  ;;  %263 = vmatprep.mubr.msk.f32.mxu0 %vm366_vm0, %v365_v0  ;;  %v94_v2 = vld [vmem:[#allocation8 + $0x78] sm:$0xff]  ;;  %v93_v5 = vld [vmem:[#allocation8 + $0x70] sm:$0xff]  ;;  %v76_v7 = vld [vmem:[#allocation6 + $0x68] sm:$0xff]  ;;  %s367_s5 = smov [#allocation9]  }
  0x27   :  { %v110_v4 = vmul.f32 %v94_v2, %v78_v1  ;;  %v109_v6 = vmul.f32 %v93_v5, %v77_v3  ;;  %v92_v8 = vld [vmem:[#allocation8 + $0x68] sm:$0xff]  ;;  %v75_v10 = vld [vmem:[#allocation6 + $0x60] sm:$0xff]  ;;  %v74_v13 = vld [vmem:[#allocation6 + $0x58] sm:$0xff]  ;;  %s203_s6 = sshll.u32 %s367_s5, 4  ;;  %s204_s6 = int_to_ptr.vmem [resolvable:$true] %s203_s6 }
  0x28   :  { %v108_v9 = vmul.f32 %v92_v8, %v76_v7  ;;  %v91_v11 = vld [vmem:[#allocation8 + $0x60] sm:$0xff]  ;;  %v90_v14 = vld [vmem:[#allocation8 + $0x58] sm:$0xff]  ;;  %v73_v16 = vld [vmem:[#allocation6 + $0x50] sm:$0xff]  ;;  %s334_s7 = scalar_lea.vmem %s204_s6, 128  ;;  %p339_p2 = scmp.lt.s32.totalorder %s204_s6, %s204_s6 }
  0x29   :  { %232 = vmatpush3.xpose.msra.mxu0 %v110_v4  ;;  %v107_v12 = vmul.f32 %v91_v11, %v75_v10  ;;  %v106_v15 = vmul.f32 %v90_v14, %v74_v13  ;;  %v89_v17 = vld [vmem:[#allocation8 + $0x50] sm:$0xff]  ;;  %v72_v19 = vld [vmem:[#allocation6 + $0x48] sm:$0xff]  ;;  %v71_v22 = vld [vmem:[#allocation6 + $0x40] sm:$0xff]  ;;  %p335_p1 = scmp.ne.s32.totalorder %s204_s6, %s334_s7  ;;  %p340_p3 = scmp.lt.s32.totalorder %s334_s7, %s334_s7 }
  0x2a   :  { %233 = vmatprep.subr.mxu0 %v365_v0  ;;  %v105_v18 = vmul.f32 %v89_v17, %v73_v16  ;;  %v88_v20 = vld [vmem:[#allocation8 + $0x48] sm:$0xff]  ;;  %v87_v23 = vld [vmem:[#allocation8 + $0x40] sm:$0xff]  ;;  %v70_v25 = vld [vmem:[#allocation6 + $0x38] sm:$0xff] }
  0x2b   :  { %v104_v21 = vmul.f32 %v88_v20, %v72_v19  ;;  %v103_v24 = vmul.f32 %v87_v23, %v71_v22  ;;  %v86_v26 = vld [vmem:[#allocation8 + $0x38] sm:$0xff]  ;;  %v69_v28 = vld [vmem:[#allocation6 + $0x30] sm:$0xff]  ;;  %v68_v31 = vld [vmem:[#allocation6 + $0x28] sm:$0xff]  ;;  %p341_p4 = por %p340_p3, %p339_p2 }
  0x2c   :  { %v102_v27 = vmul.f32 %v86_v26, %v70_v25  ;;  %v85_v29 = vld [vmem:[#allocation8 + $0x30] sm:$0xff]  ;;  %v84_v32 = vld [vmem:[#allocation8 + $0x28] sm:$0xff]  ;;  %v67_v34 = vld [vmem:[#allocation6 + $0x20] sm:$0xff] }
  0x2d   :  { %234 = vmatpush3.xpose.msra.mxu0 %v109_v6  ;;  %v101_v30 = vmul.f32 %v85_v29, %v69_v28  ;;  %v100_v33 = vmul.f32 %v84_v32, %v68_v31  ;;  %v83_v35 = vld [vmem:[#allocation8 + $0x20] sm:$0xff]  ;;  %v66_v37 = vld [vmem:[#allocation6 + $0x18] sm:$0xff]  ;;  %v65_v40 = vld [vmem:[#allocation6 + $0x10] sm:$0xff]  ;;  %p342_p5 = pnand %p341_p4, %p335_p1 }
  0x2e   :  { %235 = vmatprep.subr.mxu0 %v365_v0  ;;  %v99_v36 = vmul.f32 %v83_v35, %v67_v34  ;;  %v82_v38 = vld [vmem:[#allocation8 + $0x18] sm:$0xff]  ;;  %v81_v41 = vld [vmem:[#allocation8 + $0x10] sm:$0xff]  ;;  %v64_v43 = vld [vmem:[#allocation6 + $0x8] sm:$0xff] }
  0x2f   :  { %v98_v39 = vmul.f32 %v82_v38, %v66_v37  ;;  %v97_v42 = vmul.f32 %v81_v41, %v65_v40  ;;  %v80_v44 = vld [vmem:[#allocation8 + $0x8] sm:$0xff]  ;;  %v63_v46 = vld [vmem:[#allocation6] sm:$0xff]  ;;  %v62_v49 = vld [vmem:[#allocation3] sm:$0xff] }
  0x30   :  { %v96_v45 = vmul.f32 %v80_v44, %v64_v43  ;;  %v79_v47 = vld [vmem:[#allocation8] sm:$0xff]  ;;  %v213_v50 = vld [vmem:[%s428_s3] ss:$0 sm:$0xff] }
  0x31   :  { %236 = vmatpush3.xpose.msra.mxu0 %v108_v9  ;;  %v95_v48 = vmul.f32 %v79_v47, %v63_v46 }
  0x32   :  { %237 = vmatprep.subr.mxu0 %v365_v0 }
  0x35   :  { %238 = vmatpush3.xpose.msra.mxu0 %v107_v12 }
  0x36   :  { %239 = vmatprep.subr.mxu0 %v365_v0 }
  0x39   :  { %240 = vmatpush3.xpose.msra.mxu0 %v106_v15 }
  0x3a   :  { %241 = vmatprep.subr.mxu0 %v365_v0 }
  0x3d   :  { %242 = vmatpush3.xpose.msra.mxu0 %v105_v18 }
  0x3e   :  { %243 = vmatprep.subr.mxu0 %v365_v0 }
  0x41   :  { %244 = vmatpush3.xpose.msra.mxu0 %v104_v21 }
  0x42   :  { %245 = vmatprep.subr.mxu0 %v365_v0 }
  0x45   :  { %246 = vmatpush3.xpose.msra.mxu0 %v103_v24 }
  0x46   :  { %247 = vmatprep.subr.mxu0 %v365_v0 }
  0x49   :  { %248 = vmatpush3.xpose.msra.mxu0 %v102_v27 }
  0x4a   :  { %249 = vmatprep.subr.mxu0 %v365_v0 }
  0x4d   :  { %250 = vmatpush3.xpose.msra.mxu0 %v101_v30 }
  0x4e   :  { %251 = vmatprep.subr.mxu0 %v365_v0 }
  0x51   :  { %252 = vmatpush3.xpose.msra.mxu0 %v100_v33 }
  0x52   :  { %253 = vmatprep.subr.mxu0 %v365_v0 }
  0x55   :  { %254 = vmatpush3.xpose.msra.mxu0 %v99_v36 }
  0x56   :  { %255 = vmatprep.subr.mxu0 %v365_v0 }
  0x59   :  { %256 = vmatpush3.xpose.msra.mxu0 %v98_v39 }
  0x5a   :  { %257 = vmatprep.subr.mxu0 %v365_v0 }
  0x5d   :  { %258 = vmatpush3.xpose.msra.mxu0 %v97_v42 }
  0x5e   :  { %259 = vmatprep.subr.mxu0 %v365_v0 }
  0x61   :  { %260 = vmatpush3.xpose.msra.mxu0 %v96_v45 }
  0x62   :  { %261 = vmatprep.subr.mxu0 %v365_v0 }
  0x65   :  { %262 = vmatpush3.xpose.msra.mxu0 %v95_v48 }
  0x68   :  { %264 = vmatmul.mubr.f32.vlgmr.msra.gmra.mxu0 %v62_v49 }
 0x128   :  { %v178_v51 = vpop.f32.mrf.mxu0 }
 0x129   :  { %v195_v52 = vadd.f32 %v213_v50, %v178_v51 }
 0x12a   :  { %v265_v53 = vpop.f32.mrf.mxu0 }
 0x12b   :  { %196 = vst [vmem:[#allocation9] sm:$0xff] %v195_v52 }
 0x12c   :  { %345 = shalt.err (!%p342_p5)
}
 0x12d   :  { %206 = dma.vmem_to_hbm [thread:$0]  %s204_s6, 128, %s429_s4, [#allocation5]  }
 0x12e   :  { %358 = dma.done.wait [#allocation5], 128  }
 0x12f   :  { %359 = vsyncadd [#allocation5], 4294967168 }
 0x130   :  { %210 = vsyncpa [#allocation4], 1 }
 0x131   :  { %211 = vsyncpa [#allocation7], 1 }
 0x132   :  { %212 = vsyncpa [#allocation5], 1 }

</bundles_post_ra>
